<compile_context>
chip_gen: v6e
topology: v6e:2x2x1
jax: 0.10.0
libtpu: 0.0.40
codegen_flags: <defaults>
</compile_context>

<pallas_src>
import functools

import jax
import jax.numpy as jnp
from jax.experimental import pallas as pl
from jax.experimental.pallas import tpu as pltpu


def _region_nce_kernel(q_ref, k_ref, o_ref, *, nce_t, bb, matmul_dtype):
    # q_ref / k_ref blocks: (Bb, N, C); o_ref block: (1, 1, 128).
    n = q_ref.shape[1]
    inv_t = jnp.float32(1.0 / nce_t)

    # Fold the temperature into q once (Bb*N*C muls, not Bb*N*N).
    q = q_ref[...].astype(jnp.float32) * inv_t          # (Bb, N, C) f32
    k = k_ref[...]                                      # (Bb, N, C)

    md = matmul_dtype if matmul_dtype is not None else k_ref.dtype
    q = q.astype(md)
    k = k.astype(md)

    # Positive-logit mask: flattened index 0 == s[0, 0]. Hoisted out of the
    # batch loop (JAX does not CSE broadcast/iota inside loops).
    row = jax.lax.broadcasted_iota(jnp.int32, (n, n), 0)
    col = jax.lax.broadcasted_iota(jnp.int32, (n, n), 1)
    pos_mask = (row == 0) & (col == 0)

    lane = jax.lax.broadcasted_iota(jnp.int32, (1, 128), 1)
    losses = jnp.zeros((1, 128), jnp.float32)

    # Contract the channel dim of both operands: k[b] @ q[b]^T without an
    # explicit transpose (natural MXU orientation).
    dn = (((1,), (1,)), ((), ()))

    for b in range(bb):  # static unroll; bb is small (<= 8)
        s = jax.lax.dot_general(
            k[b], q[b], dimension_numbers=dn,
            preferred_element_type=jnp.float32)          # (N, N) f32 logits / T

        # Numerically stable logsumexp over all N*N logits (f32 exp/log/sum;
        # bf16 transcendentals are not available on v5e's VPU/EUP).
        m = jnp.max(s)
        lse = jnp.log(jnp.sum(jnp.exp(s - m))) + m

        # Positive logit straight from the same MXU result (masked select-sum).
        pos = jnp.sum(jnp.where(pos_mask, s, 0.0))

        # Pack this batch's scalar loss into lane b of the output row.
        losses = losses + jnp.where(lane == b, lse - pos, 0.0)

    # Single lane-dense store per grid step.
    o_ref[...] = losses.reshape(1, 1, 128)


def _pick_block_b(B, N, C, dtype, max_block_bytes=4 << 20, max_bb=8):
    """Largest divisor of B that (a) keeps the input block under a VMEM budget
    sized for v7x (64 MiB VMEM, 32 MiB scoped default, double-buffered inputs)
    and (b) leaves >= 2 grid steps when B >= 2 so both v7x TCs get work."""
    itemsize = jnp.dtype(dtype).itemsize
    per_batch = max(N * C * itemsize, 1)
    cap = max(1, min(max_bb, max_block_bytes // per_batch))
    if B >= 2:
        cap = min(cap, max(1, B // 2))
    for bb in range(min(cap, B), 0, -1):
        if B % bb == 0:
            return bb
    return 1


def region_nce_loss(feat_q, feat_k, nce_t=0.07, matmul_dtype=None, block_b=None):
    """Pallas implementation of RegionNCELoss.forward. Returns loss of shape (B,).

    matmul_dtype: optional MXU operand dtype (e.g. jnp.bfloat16 for native-rate
    MXU on v5e/v6e/v7x); accumulation and all elementwise math stay f32.
    """
    assert feat_q.shape == feat_k.shape
    B, N, C = feat_q.shape

    if block_b is None:
        block_b = _pick_block_b(B, N, C, feat_q.dtype)
    assert B % block_b == 0, (B, block_b)
    g = B // block_b

    out = pl.pallas_call(
        functools.partial(_region_nce_kernel, nce_t=float(nce_t),
                          bb=block_b, matmul_dtype=matmul_dtype),
        out_shape=jax.ShapeDtypeStruct((g, 1, 128), jnp.float32),
        grid_spec=pltpu.PrefetchScalarGridSpec(
            num_scalar_prefetch=0,
            grid=(g,),
            in_specs=[
                pl.BlockSpec((block_b, N, C), lambda i: (i, 0, 0)),
                pl.BlockSpec((block_b, N, C), lambda i: (i, 0, 0)),
            ],
            out_specs=pl.BlockSpec((1, 1, 128), lambda i: (i, 0, 0)),
        ),
        compiler_params=pltpu.CompilerParams(
            dimension_semantics=("parallel",)),
    )(feat_q, feat_k)

    # Block i holds batches [i*block_b, (i+1)*block_b) in lanes [0, block_b).
    return out[:, 0, :block_b].reshape(B)


def _reference(feat_q, feat_k, nce_t=0.07):
    """Pure-JAX reference mirroring the PyTorch forward (f32)."""
    B = feat_q.shape[0]
    logits = jnp.einsum("bnc,bmc->bnm", feat_k, feat_q)      # bmm(k, q^T)
    out = logits.reshape(B, -1) / nce_t
    lse = jax.scipy.special.logsumexp(out, axis=-1)
    return lse - out[:, 0]


def _reference_bf16(feat_q, feat_k, nce_t=0.07):
    """Reference with the same bf16-operand / f32-accumulate matmul as the kernel."""
    B = feat_q.shape[0]
    q = (feat_q.astype(jnp.float32) / nce_t).astype(jnp.bfloat16)
    k = feat_k.astype(jnp.bfloat16)
    logits = jnp.einsum("bnc,bmc->bnm", k, q,
                        preferred_element_type=jnp.float32)
    out = logits.reshape(B, -1)
    lse = jax.scipy.special.logsumexp(out, axis=-1)
    return lse - out[:, 0]


if __name__ == "__main__":
    nce_T = 0.07

    # Case 1: shapes implied by the module config (opt.batch_size = 2).
    B, N, C = 2, 16, 32
    kq, kk = jax.random.split(jax.random.PRNGKey(0))
    feat_q = jax.random.normal(kq, (B, N, C), dtype=jnp.float32)
    feat_k = jax.random.normal(kk, (B, N, C), dtype=jnp.float32)

    loss = jax.block_until_ready(region_nce_loss(feat_q, feat_k, nce_t=nce_T))
    ref = _reference(feat_q, feat_k, nce_t=nce_T)
    assert loss.shape == (B,)
    assert jnp.allclose(loss, ref, rtol=1e-5, atol=1e-5), (loss, ref)

    # Case 2: larger batch exercises the Bb-batched grid step (Bb=8, 2 steps).
    B2 = 16
    kq2, kk2 = jax.random.split(jax.random.PRNGKey(1))
    fq2 = jax.random.normal(kq2, (B2, N, C), dtype=jnp.float32)
    fk2 = jax.random.normal(kk2, (B2, N, C), dtype=jnp.float32)

    loss2 = jax.block_until_ready(region_nce_loss(fq2, fk2, nce_t=nce_T))
    ref2 = _reference(fq2, fk2, nce_t=nce_T)
    assert loss2.shape == (B2,)
    assert jnp.allclose(loss2, ref2, rtol=1e-5, atol=1e-5), (loss2, ref2)

    # Case 3: bf16 MXU-operand path (f32 accumulation) — native MXU dtype on
    # v5e/v6e/v7x; compared against a reference using the identical cast.
    loss3 = jax.block_until_ready(
        region_nce_loss(fq2, fk2, nce_t=nce_T, matmul_dtype=jnp.bfloat16))
    ref3 = _reference_bf16(fq2, fk2, nce_t=nce_T)
    assert loss3.shape == (B2,)
    assert jnp.allclose(loss3, ref3, rtol=2e-3, atol=5e-2), (loss3, ref3)

    print("KERNEL_OK")
</pallas_src>

<mosaic_0001>
module attributes {stable_mosaic.version = 11 : i64} {
  func.func @_region_nce_kernel(%arg0: i32, %arg1: memref<1x16x32xf32, #tpu.memory_space<vmem>>, %arg2: memref<1x16x32xf32, #tpu.memory_space<vmem>>, %arg3: memref<1x1x128xf32, #tpu.memory_space<vmem>>) attributes {dimension_semantics = [#tpu.dimension_semantics<parallel>], iteration_bounds = array<i64: 2>, scalar_prefetch = 0 : i64, scratch_operands = 0 : i64, tpu.core_type = #tpu.core_type<tc>, window_params = [{transform_indices = @transform_0, window_bounds = array<i64: 1, 16, 32>}, {transform_indices = @transform_1, window_bounds = array<i64: 1, 16, 32>}, {transform_indices = @transform_2, window_bounds = array<i64: 1, 1, 128>}]} {
    %c0 = arith.constant 0 : index
    %c0_0 = arith.constant 0 : index
    %c0_1 = arith.constant 0 : index
    %0 = vector.load %arg1[%c0, %c0_0, %c0_1] : memref<1x16x32xf32, #tpu.memory_space<vmem>>, vector<1x16x32xf32>
    %cst = arith.constant 14.2857141 : f32
    %1 = vector.broadcast %cst : f32 to vector<1x16x32xf32>
    %2 = arith.mulf %0, %1 : vector<1x16x32xf32>
    %c0_2 = arith.constant 0 : index
    %c0_3 = arith.constant 0 : index
    %c0_4 = arith.constant 0 : index
    %3 = vector.load %arg2[%c0_2, %c0_3, %c0_4] : memref<1x16x32xf32, #tpu.memory_space<vmem>>, vector<1x16x32xf32>
    %4 = tpu.iota {dimensions = array<i32: 0>} : vector<16x16xi32>
    %5 = tpu.iota {dimensions = array<i32: 1>} : vector<16x16xi32>
    %c0_i32 = arith.constant 0 : i32
    %6 = vector.broadcast %c0_i32 : i32 to vector<16x16xi32>
    %7 = arith.cmpi eq, %4, %6 : vector<16x16xi32>
    %c0_i32_5 = arith.constant 0 : i32
    %8 = vector.broadcast %c0_i32_5 : i32 to vector<16x16xi32>
    %9 = arith.cmpi eq, %5, %8 : vector<16x16xi32>
    %10 = arith.andi %7, %9 : vector<16x16xi1>
    %11 = tpu.iota {dimensions = array<i32: 1>} : vector<1x128xi32>
    %cst_6 = arith.constant 0.000000e+00 : f32
    %12 = vector.broadcast %cst_6 : f32 to vector<1x128xf32>
    %13 = vector.shape_cast %3 : vector<1x16x32xf32> to vector<16x32xf32>
    %14 = vector.shape_cast %2 : vector<1x16x32xf32> to vector<16x32xf32>
    %cst_7 = arith.constant dense<0.000000e+00> : vector<16x16xf32>
    %15 = tpu.matmul %13, %14, %cst_7 {dimension_numbers = #tpu.dot_dimension_numbers<[1], [1], [0], [0], [0, 0, 1, 0], [], []>} : vector<16x32xf32>, vector<16x32xf32>, vector<16x16xf32> -> vector<16x16xf32>
    %16 = vector.shape_cast %15 : vector<16x16xf32> to vector<1x16x16xf32>
    %cst_8 = arith.constant dense<0xFF800000> : vector<1xf32>
    %17 = vector.multi_reduction <maximumf>, %16, %cst_8 [1, 2] : vector<1x16x16xf32> to vector<1xf32>
    %18 = vector.shape_cast %17 : vector<1xf32> to vector<1x1x1xf32>
    %19 = vector.extract %18[0, 0, 0] : f32 from vector<1x1x1xf32>
    %20 = vector.broadcast %19 : f32 to vector<16x16xf32>
    %21 = arith.subf %15, %20 : vector<16x16xf32>
    %22 = math.exp %21 : vector<16x16xf32>
    %23 = vector.shape_cast %22 : vector<16x16xf32> to vector<1x16x16xf32>
    %cst_9 = arith.constant dense<0.000000e+00> : vector<1xf32>
    %24 = vector.multi_reduction <add>, %23, %cst_9 [1, 2] : vector<1x16x16xf32> to vector<1xf32>
    %25 = vector.shape_cast %24 : vector<1xf32> to vector<1x1x1xf32>
    %26 = vector.extract %25[0, 0, 0] : f32 from vector<1x1x1xf32>
    %27 = math.log %26 : f32
    %28 = arith.addf %27, %19 : f32
    %cst_10 = arith.constant 0.000000e+00 : f32
    %29 = vector.broadcast %cst_10 : f32 to vector<16x16xf32>
    %30 = arith.select %10, %15, %29 : vector<16x16xi1>, vector<16x16xf32>
    %31 = vector.shape_cast %30 : vector<16x16xf32> to vector<1x16x16xf32>
    %cst_11 = arith.constant dense<0.000000e+00> : vector<1xf32>
    %32 = vector.multi_reduction <add>, %31, %cst_11 [1, 2] : vector<1x16x16xf32> to vector<1xf32>
    %33 = vector.shape_cast %32 : vector<1xf32> to vector<1x1x1xf32>
    %34 = vector.extract %33[0, 0, 0] : f32 from vector<1x1x1xf32>
    %c0_i32_12 = arith.constant 0 : i32
    %35 = vector.broadcast %c0_i32_12 : i32 to vector<1x128xi32>
    %36 = arith.cmpi eq, %11, %35 : vector<1x128xi32>
    %37 = arith.subf %28, %34 : f32
    %cst_13 = arith.constant 0.000000e+00 : f32
    %38 = vector.broadcast %37 : f32 to vector<1x128xf32>
    %39 = vector.broadcast %cst_13 : f32 to vector<1x128xf32>
    %40 = arith.select %36, %38, %39 : vector<1x128xi1>, vector<1x128xf32>
    %41 = arith.addf %12, %40 : vector<1x128xf32>
    %42 = vector.shape_cast %41 : vector<1x128xf32> to vector<1x1x128xf32>
    %c0_14 = arith.constant 0 : index
    %c0_15 = arith.constant 0 : index
    %c0_16 = arith.constant 0 : index
    %43 = vector.load %arg3[%c0_14, %c0_15, %c0_16] : memref<1x1x128xf32, #tpu.memory_space<vmem>>, vector<1x1x128xf32>
    tpu.vector_store %arg3[%c0_14, %c0_15, %c0_16], %42 {strides = array<i32>} : memref<1x1x128xf32, #tpu.memory_space<vmem>>, vector<1x1x128xf32>,
    return
  }
  func.func @transform_0(%arg0: i32) -> (i32, i32, i32) {
    %c0_i32 = arith.constant 0 : i32
    %c0_i32_0 = arith.constant 0 : i32
    %c0_i32_1 = arith.constant 0 : i32
    return %arg0, %c0_i32, %c0_i32_0 : i32, i32, i32
  }
  func.func @transform_1(%arg0: i32) -> (i32, i32, i32) {
    %c0_i32 = arith.constant 0 : i32
    %c0_i32_0 = arith.constant 0 : i32
    %c0_i32_1 = arith.constant 0 : i32
    return %arg0, %c0_i32, %c0_i32_0 : i32, i32, i32
  }
  func.func @transform_2(%arg0: i32) -> (i32, i32, i32) {
    %c0_i32 = arith.constant 0 : i32
    %c0_i32_0 = arith.constant 0 : i32
    %c0_i32_1 = arith.constant 0 : i32
    return %arg0, %c0_i32, %c0_i32_0 : i32, i32, i32
  }
}

</mosaic_0001>

<bundles_post_ra>
// kernel: tpu_custom_call.1
= control target key start
LH: loop header
LB: loop body
LE: loop exit
PB: predicated region body
PF: predicated region fallthrough
CT: control target
= control target key end

     0   :  { %7 = vsyncpa [#allocation3], 0  ;;  %s935_s0 = inlined_call_operand.hbm [shape: f32[2,16,32], index: 0, kind: input, shape index: {}]   ;;  %s936_s1 = inlined_call_operand.hbm [shape: f32[2,16,32], index: 1, kind: input, shape index: {}]   ;;  %s937_s2 = inlined_call_operand.hbm [shape: f32[2,1,128], index: 2, kind: output, shape index: {}]  }
   0x1   :  { %9 = vsyncpa [#allocation3 + $0x1], 0 }
   0x2   :  { %10 = vsyncpa [#allocation6], 0 }
   0x3   :  { %12 = vsyncpa [#allocation6 + $0x1], 0 }
   0x4   :  { %13 = vsyncpa [#allocation4], 0 }
   0x5   :  { %15 = vsyncpa [#allocation4 + $0x1], 0  ;;  %s708_s9 = smov 0   ;;  %s710_s10 = smov 0  }
   0x6   :  { %s712_s11 = smov 0   ;;  %s714_s12 = smov 0  }
   0x7 LB: > { %s729_s13 = sadd.s32 4294967295, %s686_s12   ;;  %s463_s14 = sadd.s32 4294967294, %s686_s12   ;;  %s686_s12 = sphi %s714_s12, %s953_s12   ;;  %s682_s11 = sphi %s712_s11, %s952_s11   ;;  %s678_s10 = sphi %s710_s10, %s951_s10   ;;  %s674_s9 = sphi %s708_s9, %s950_s9  }
   0x8   : > { %s733_s15 = sadd.s32 1, %s686_s12   ;;  %s28_s16 = sadd.s32 1, %s682_s11 }
   0x9   : > { %s25_s17 = ssub.s32 %s686_s12, %s733_s15  ;;  %p35_p0 = scmp.ne.s32.totalorder %s682_s11, %s678_s10 }
   0xa   : > { %p26_p1 = scmp.eq.s32.totalorder %s25_s17, 0  ;;  %p36_p2 = scmp.eq.s32.totalorder %s686_s12, 0 }
   0xb   : > { %p41_p3 = scmp.ne.s32.totalorder %s678_s10, %s674_s9  ;;  %p42_p4 = scmp.eq.s32.totalorder %s729_s13, 0 }
   0xc   : > { %s745_s18 = scalar_select %p26_p1, %s682_s11, %s28_s16  }
   0xd   : > { %p747_p5 = por %p36_p2, %p35_p0  ;;  %p751_p6 = por %p42_p4, %p41_p3 }
   0xe   : > { %p91_p7 = scmp.eq.s32.totalorder %s729_s13, 1  ;;  %p97_p8 = scmp.eq.s32.totalorder %s463_s14, 1 }
   0xf   : > { %s941_s20 = scalar_select %p751_p6, 1, 0 }
  0x10   : > { %p520_p10 = scmp.lt.s32.totalorder %s686_s12, 2  ;;  %p758_p11 = por %p91_p7, %p35_p0 }
  0x11   : > { %p762_p12 = por %p97_p8, %p41_p3  ;;  %s767_s23 = sand.u32 1, %s682_s11  }
  0x12   : > { %s942_s21 = scalar_select %p758_p11, 1, 0 }
  0x13   : > { %s943_s22 = scalar_select %p762_p12, 1, 0 }
  0x14   : > { %s482_s24 = sshll.u32 %s686_s12, 8  ;;  %s466_s25 = sshll.u32 %s767_s23, 4 }
  0x15   : > { %s776_s28 = scalar_lea.hbm %s935_s0, %s482_s24  ;;  %s121_s29 = scalar_lea.vmem [#allocation2], %s466_s25 }
  0x16   : > { %s128_s30 = sshll.u32 %s121_s29, 4  ;;  %p782_p13 = pnand %p520_p10, %p747_p5  ;;  %s786_s30 = int_to_ptr.vmem [resolvable:$true] %s128_s30 }
  0x17   : > { %s118_s4 = scalar_lea.sflag [#allocation3], %s767_s23  ;;  %s562_s5 = scalar_lea.hbm %s776_s28, 256 }
  0x18   : > { %p563_p0 = scmp.ne.s32.totalorder %s776_s28, %s562_s5  ;;  %p564_p1 = pneg %p782_p13 }
  0x19   : > { %s567_s8 = scalar_lea.hbm %s935_s0, 512  ;;  %p568_p4 = scmp.lt.s32.totalorder %s776_s28, %s935_s0 }
  0x1a   : > { %p565_p2 = pnand %p564_p1, %p563_p0  ;;  %p569_p5 = scmp.lt.s32.totalorder %s567_s8, %s562_s5 }
  0x1c   : > { %p566_p3 = pneg %p565_p2  ;;  %p570_p7 = por %p569_p5, %p568_p4 }
  0x1e   : > { %p571_p8 = pnand %p570_p7, %p566_p3 }
  0x20   : > { %574 = shalt.err (!%p571_p8)
}
  0x21   : > { %s575_s17 = scalar_lea.vmem %s786_s30, 256  ;;  %s688_s19 = smov [#allocation2]  }
  0x22   : > { %p576_p10 = scmp.ne.s32.totalorder %s786_s30, %s575_s17  ;;  %s580_s26 = sshll.u32 %s688_s19, 4  ;;  %s581_s26 = int_to_ptr.vmem [resolvable:$false] %s580_s26 }
  0x23   : > { %s582_s27 = scalar_lea.vmem %s581_s26, 512  ;;  %p583_p9 = scmp.lt.s32.totalorder %s786_s30, %s581_s26 }
  0x24   : > { %p578_p0 = pnand %p576_p10, %p564_p1  ;;  %p584_p12 = scmp.lt.s32.totalorder %s582_s27, %s575_s17 }
  0x26   : > { %p579_p2 = pneg %p578_p0  ;;  %p585_p11 = por %p584_p12, %p583_p9 }
  0x28   : > { %p586_p4 = pnand %p585_p11, %p579_p2 }
  0x2a   : > { %589 = shalt.err (!%p586_p4)
}
  0x2b   : > { %s689_s29 = smov 128   ;;  %s690_s5 = smov 8  }
  0x2c   : > { %512 = dma.hbm_to_vmem [thread:$0]  (!%p782_p13), %s776_s28, 256, %s786_s30, %s118_s4, %s689_s29, %s689_s29, %s690_s5  }
  0x2d   : > { %p472_p9 = scmp.ge.s32.totalorder %s686_s12, 1  ;;  %p157_p11 = scmp.lt.s32.totalorder %s686_s12, 3 }
  0x2e   : > { %s829_s14 = scalar_lea.hbm %s936_s1, %s482_s24  ;;  %s142_s16 = scalar_lea.vmem [#allocation5], %s466_s25 }
  0x2f   : > { %p820_p12 = pnand %p472_p9, %p157_p11  ;;  %s149_s17 = sshll.u32 %s142_s16, 4  ;;  %s833_s17 = int_to_ptr.vmem [resolvable:$true] %s149_s17 }
  0x30   : > { %s139_s28 = scalar_lea.sflag [#allocation6], %s767_s23  ;;  %s590_s30 = scalar_lea.hbm %s829_s14, 256 }
  0x31   : > { %p591_p3 = scmp.ne.s32.totalorder %s829_s14, %s590_s30  ;;  %s595_s24 = scalar_lea.hbm %s936_s1, 512 }
  0x32   : > { %p596_p8 = scmp.lt.s32.totalorder %s829_s14, %s936_s1  ;;  %p597_p10 = scmp.lt.s32.totalorder %s595_s24, %s590_s30 }
  0x33   : > { %p593_p5 = pnand %p591_p3, %p564_p1 }
  0x34   : > { %p598_p0 = por %p597_p10, %p596_p8 }
  0x35   : > { %p594_p7 = pneg %p593_p5 }
  0x37   : > { %p599_p2 = pnand %p598_p0, %p594_p7 }
  0x39   : > { %602 = shalt.err (!%p599_p2)
}
  0x3a   : > { %s603_s23 = scalar_lea.vmem %s833_s17, 256  ;;  %s691_s25 = smov [#allocation5]  }
  0x3b   : > { %p604_p4 = scmp.ne.s32.totalorder %s833_s17, %s603_s23  ;;  %s608_s7 = sshll.u32 %s691_s25, 4  ;;  %s609_s7 = int_to_ptr.vmem [resolvable:$false] %s608_s7 }
  0x3c   : > { %s610_s8 = scalar_lea.vmem %s609_s7, 512  ;;  %p611_p3 = scmp.lt.s32.totalorder %s833_s17, %s609_s7 }
  0x3d   : > { %p606_p9 = pnand %p604_p4, %p564_p1  ;;  %p612_p5 = scmp.lt.s32.totalorder %s610_s8, %s603_s23 }
  0x3f   : > { %p607_p11 = pneg %p606_p9  ;;  %p613_p6 = por %p612_p5, %p611_p3 }
  0x41   : > { %p614_p8 = pnand %p613_p6, %p607_p11 }
  0x43   : > { %617 = shalt.err (!%p614_p8)
}
  0x44   : > { %515 = dma.hbm_to_vmem [thread:$0]  (!%p782_p13), %s829_s14, 256, %s833_s17, %s139_s28, %s689_s29, %s689_s29, %s690_s5  }
  0x45   : > { %161 = sbr.rel (%p820_p12) target bundleno = 795 (0x31b), region = 28  ;;  %s864_s16 = sand.u32 (!%p820_p12), 1, %s678_s10  }
  0x46   : > { %s473_s30 = sshll.u32 (!%p820_p12), %s864_s16, 4  ;;  %s164_s4 = scalar_lea.sflag (!%p820_p12), [#allocation3], %s864_s16 }
  0x47   : > { %s167_s19 = scalar_lea.vmem (!%p820_p12), [#allocation2], %s473_s30  ;;  %p946_p6 = scmp.ne.s32.totalorder (!%p820_p12), %s941_s20, 0 }
  0x4a   : > { %661 = dma.done.wait (%p946_p6), %s164_s4, 256  }
  0x4b   : > { %663 = vsyncadd (%p946_p6), %s164_s4, 4294967040  ;;  %s173_s3 = scalar_lea.sflag [#allocation6], %s864_s16  ;;  %s176_s29 = scalar_lea.vmem [#allocation5], %s473_s30 }
  0x4c   : > { %665 = dma.done.wait (%p946_p6), %s173_s3, 256  }
  0x4d   : > { %667 = vsyncadd (%p946_p6), %s173_s3, 4294967040  ;;  %v202_v0 = vld [vmem:[%s167_s19 + $0x8] sm:$0xff]  ;;  %vm217_vm0 = vcmask 261120   ;;  %v201_v1 = vld [vmem:[%s167_s19] sm:$0xff]  ;;  %v207_v6 = vlaneseq  ;;  %vm305_vm4 = vcmask 130048   ;;  %s479_s17 = sshll.u32 %s729_s13, 4 }
  0x4e   : > { %v205_v2 = vld [vmem:[%s176_s29] sm:$0xff]  ;;  %v204_v3 = vmul.f32 14.285714, %v202_v0  ;;  %v203_v4 = vmul.f32 14.285714, %v201_v1  ;;  %v206_v5 = vld [vmem:[%s176_s29 + $0x8] sm:$0xff]  ;;  %s896_s7 = scalar_lea.hbm %s937_s2, %s479_s17 }
  0x4f   : > { %492 = vmatprep.mubr.msk.f32.mxu0 %vm217_vm0, %v205_v2  ;;  %v208_v7 = vshrl.u32 %v207_v6, 7  ;;  %v877_v8 = vand.u32 127, %v207_v6  ;;  %s200_s24 = scalar_lea.vmem [#allocation7], %s864_s16  ;;  %s362_s8 = scalar_lea.sflag [#allocation4], %s864_s16 }
  0x50   : > { %488 = vmatprep.subr.msk.mxu0 %vm217_vm0, %v204_v3  ;;  %s374_s26 = sshll.u32 %s200_s24, 4  ;;  %p947_p1 = scmp.ne.s32.totalorder %s942_s21, 0  ;;  %s375_s26 = int_to_ptr.vmem [resolvable:$true] %s374_s26 }
  0x51   : > { %489 = vmatpush3.xpose.msk.msra.mxu0 %vm217_vm0, %v204_v3  ;;  %vm212_vm1 = vcmp.eq.s32.totalorder %v208_v7, 0  ;;  %vm214_vm2 = vcmp.eq.s32.totalorder %v877_v8, 0  ;;  %s618_s30 = scalar_lea.vmem %s375_s26, 16  ;;  %s692_s13 = smov [#allocation7]  }
  0x52   : > { %490 = vmatprep.subr.msk.mxu0 %vm217_vm0, %v203_v4  ;;  %vm215_vm3 = vmand %vm212_vm1, %vm214_vm2  ;;  %p619_p13 = scmp.ne.s32.totalorder %s375_s26, %s618_s30  ;;  %s622_s4 = sshll.u32 %s692_s13, 4  ;;  %s623_s4 = int_to_ptr.vmem [resolvable:$false] %s622_s4 }
  0x53   : > { %s624_s19 = scalar_lea.vmem %s623_s4, 32  ;;  %p625_p10 = scmp.lt.s32.totalorder %s375_s26, %s623_s4 }
  0x54   : > { %p620_p12 = pnand %p619_p13, %p947_p1  ;;  %p626_p0 = scmp.lt.s32.totalorder %s624_s19, %s618_s30 }
  0x55   : > { %491 = vmatpush3.xpose.msk.msra.mxu0 %vm217_vm0, %v203_v4 }
  0x56   : > { %p621_p7 = pneg %p620_p12  ;;  %p627_p2 = por %p626_p0, %p625_p10 }
  0x58   : > { %493 = vmatmul.mubr.msk.f32.vlgmr.msra.gmra.mxu0 %vm217_vm0, %v206_v5  ;;  %p628_p4 = pnand %p627_p2, %p621_p7 }
 0x118   : > { %v494_v9 = vpop.f32.mrf.mxu0 }
 0x119   : > { %v307_v13 = vsel %vm305_vm4, %v494_v9, -inf }
 0x11a   : > { %v296_v10 = vpop.f32.mrf.mxu0 }
 0x11b   : > { %v342_v11 = vsel %vm215_vm3, %v296_v10, 0.0  ;;  %v306_v12 = vsel %vm305_vm4, %v296_v10, -inf }
 0x11c   : > { %v344_v14 = vsel %vm305_vm4, %v342_v11, 0.0  ;;  %v308_v15 = vmax.f32 %v306_v12, %v307_v13 }
 0x11d   : > { %347 = vadd.xlane.f32.xlu1 %v344_v14 }
 0x11e   : > { %309 = vmax.xlane.f32.xlu0 %v308_v15 }
 0x1a6   : > { %v348_v40 = vpop.xlane.xlu1 %347 }
 0x1a7   : > { %v310_v16 = vpop.xlane.xlu0 %309  ;;  %v349_v41 = vrot.slane %v348_v40, 4 }
 0x1a8   : > { %v311_v17 = vrot.slane %v310_v16, 4 }
 0x1a9   : > { %v350_v42 = vadd.f32 %v349_v41, %v348_v40 }
 0x1aa   : > { %v312_v18 = vmax.f32 %v310_v16, %v311_v17 }
 0x1ab   : > { %v351_v44 = vrot.slane %v350_v42, 2 }
 0x1ac   : > { %v313_v19 = vrot.slane %v312_v18, 2 }
 0x1ad   : > { %v352_v45 = vadd.f32 %v351_v44, %v350_v42 }
 0x1ae   : > { %v314_v20 = vmax.f32 %v312_v18, %v313_v19 }
 0x1af   : > { %v353_v46 = vrot.slane %v352_v45, 1 }
 0x1b0   : > { %v315_v21 = vrot.slane %v314_v20, 1 }
 0x1b1   : > { %v354_v49 = vadd.f32 %v353_v46, %v352_v45 }
 0x1b2   : > { %v316_v22 = vmax.f32 %v314_v20, %v315_v21 }
 0x1b4   : > { %495 = vpush %v316_v22 }
 0x1e5   : > { %s885_s20 = spop %495 }
 0x1e6   : > { %v318_v23 = vstv %s885_s20 }
 0x1e7   : > { %v319_v24 = vsub.f32 %v296_v10, %v318_v23  ;;  %v320_v25 = vsub.f32 %v494_v9, %v318_v23 }
 0x1e9   : > { %v321_v26 = vmul.f32 1.442695, %v319_v24  ;;  %v323_v27 = vmul.f32 1.442695, %v320_v25 }
 0x1eb   : > { %556 = vpow2.f32 %v321_v26 }
 0x1ec   : > { %558 = vpow2.f32 %v323_v27 }
 0x1f8   : > { %v557_v28 = vpop.eup %556 }
 0x1f9   : > { %v559_v29 = vpop.eup %558  ;;  %v325_v30 = vsel %vm305_vm4, %v557_v28, 0.0 }
 0x1fa   : > { %v326_v31 = vsel %vm305_vm4, %v559_v29, 0.0 }
 0x1fb   : > { %v327_v32 = vadd.f32 %v326_v31, %v325_v30 }
 0x1fd   : > { %328 = vadd.xlane.f32.xlu0 %v327_v32 }
 0x286   : > { %v329_v33 = vpop.xlane.xlu0 %328 }
 0x287   : > { %v330_v34 = vrot.slane %v329_v33, 4 }
 0x289   : > { %v331_v35 = vadd.f32 %v330_v34, %v329_v33 }
 0x28b   : > { %v332_v36 = vrot.slane %v331_v35, 2 }
 0x28d   : > { %v333_v37 = vadd.f32 %v332_v36, %v331_v35 }
 0x28f   : > { %v334_v38 = vrot.slane %v333_v37, 1 }
 0x291   : > { %v335_v39 = vadd.f32 %v334_v38, %v333_v37 }
 0x293   : > { %497 = vpush %v335_v39 }
 0x2c4   : > { %s498_s5 = spop %497 }
 0x2c5   : > { %v337_v43 = vstv %s498_s5 }
 0x2c6   : > { %560 = vlog2.f32 %v337_v43 }
 0x2d3   : > { %v561_v47 = vpop.eup %560 }
 0x2d4   : > { %v339_v48 = vmul.f32 0.6931472, %v561_v47 }
 0x2d6   : > { %499 = vpush %v339_v48 }
 0x2d7   : > { %501 = vpush %v354_v49 }
 0x307   : > { %s500_s6 = spop %499 }
 0x308   : > { %s341_s14 = sadd.f32 %s500_s6, %s885_s20  ;;  %s502_s28 = spop %501 }
 0x30a   : > { %s356_s27 = ssub.f32 %s341_s14, %s502_s28 }
 0x30c   : > { %v357_v50 = vstv %s356_s27 }
 0x30d   : > { %v358_v51 = vsel %vm214_vm2, %v357_v50, 0.0 }
 0x30e   : > { %360 = vst [vmem:[%s200_s24] sm:$0x1] %v358_v51 }
 0x30f   : > { %631 = shalt.err (!%p628_p4)
}
 0x310   : > { %s632_s3 = scalar_lea.hbm %s896_s7, 16  ;;  %s636_s20 = scalar_lea.hbm %s937_s2, 32 }
 0x311   : > { %p633_p9 = scmp.ne.s32.totalorder %s896_s7, %s632_s3  ;;  %p637_p5 = scmp.lt.s32.totalorder %s896_s7, %s937_s2 }
 0x312   : > { %p638_p8 = scmp.lt.s32.totalorder %s636_s20, %s632_s3 }
 0x313   : > { %p634_p11 = pnand %p633_p9, %p947_p1 }
 0x314   : > { %p639_p6 = por %p638_p8, %p637_p5 }
 0x315   : > { %p635_p3 = pneg %p634_p11 }
 0x317   : > { %p640_p13 = pnand %p639_p6, %p635_p3 }
 0x319   : > { %643 = shalt.err (!%p640_p13)
}
 0x31a   : > { %507 = dma.vmem_to_hbm [thread:$0]  (%p947_p1), %s375_s26, 16, %s896_s7, %s362_s8  }
 0x31b PF: > { %s386_s14 = sand.u32 1, %s674_s9   ;;  %p948_p12 = scmp.ne.s32.totalorder %s943_s22, 0 }
 0x31c   : > { %p949_p7 = scmp.ge.s32.totalorder %s686_s12, 2  ;;  %s387_s17 = scalar_lea.sflag [#allocation4], %s386_s14 }
 0x31e   : > { %p517_p10 = pnand %p949_p7, %p948_p12 }
 0x320   : > { %p518_p0 = pneg %p517_p10 }
 0x322   : > { %669 = dma.done.wait (%p518_p0), %s387_s17, 16  }
 0x323   : > { %671 = vsyncadd (%p518_p0), %s387_s17, 4294967280  ;;  %p18_p2 = scmp.ge.s32.totalorder %s733_s15, 4   ;;  %s950_s9 = smov %s678_s10 }
 0x324   : > { %s951_s10 = smov %s682_s11  ;;  %s952_s11 = smov %s745_s18 }
 0x325   : > { %s953_s12 = smov %s733_s15  ;;  %20 = sbr.rel (!%p18_p2) target bundleno = 7 (0x7), region = 86 }
 0x32a   :  { %391 = vsyncpa [#allocation3], 1 }
 0x32b   :  { %393 = vsyncpa [#allocation3 + $0x1], 1 }
 0x32c   :  { %394 = vsyncpa [#allocation6], 1 }
 0x32d   :  { %396 = vsyncpa [#allocation6 + $0x1], 1 }
 0x32e   :  { %397 = vsyncpa [#allocation4], 1 }
 0x32f   :  { %399 = vsyncpa [#allocation4 + $0x1], 1 }

</bundles_post_ra>
